<compile_context>
chip_gen: v7x
topology: tpu7x:2x2x1
jax: 0.10.0
libtpu: 0.0.40
codegen_flags: <defaults>
</compile_context>

<pallas_src>
import numpy as np
import jax
import jax.numpy as jnp
from jax import lax
from jax.experimental import pallas as pl
from jax.experimental.pallas import tpu as pltpu

_EPS = 1e-6
_K5 = np.array([0.05, 0.25, 0.4, 0.25, 0.05], dtype=np.float64)


def _blur_band(n):
    """Banded matrix A (n x n): (A @ v)[i] = replicate-padded 5-tap blur of v at i."""
    A = np.zeros((n, n), dtype=np.float64)
    for i in range(n):
        for a, kv in enumerate(_K5):
            r = min(max(i - 2 + a, 0), n - 1)     # replicate padding = index clamp
            A[i, r] += kv
    return A


def _laplacian_operators(H, W):
    """G_H (HxH), G_W (WxW) with laplacian(X) = X - G_H @ X @ G_W per channel.

    Folds both gaussian blurs, the replicate padding, and the even/even *4
    mask (4 = 2*2, split across the two axes) into the two operators:
        conv(4 * mask * conv(X)) = 4 * (A_H D_h A_H) X (A_W^T D_w A_W^T)
    """
    A_H = _blur_band(H)
    A_W = _blur_band(W)
    m_h = (np.arange(H) % 2 == 0).astype(np.float64)
    m_w = (np.arange(W) % 2 == 0).astype(np.float64)
    G_H = 2.0 * (A_H * m_h[None, :]) @ A_H        # 2 * A_H @ diag(m_h) @ A_H
    G_W = 2.0 * (A_W.T * m_w[None, :]) @ A_W.T    # 2 * A_W^T @ diag(m_w) @ A_W^T
    return jnp.asarray(G_H, jnp.float32), jnp.asarray(G_W, jnp.float32)


def _edge_loss_kernel(gh_ref, gw_ref, x_ref, y_ref, o_ref):
    """One batch element per grid step: per-channel MXU laplacian + Charbonnier."""
    gh = gh_ref[...]                               # (H, H) f32
    gw = gw_ref[...]                               # (W, W) f32

    x = x_ref[0].astype(jnp.float32)               # (C, H, W)  cast in VMEM
    y = y_ref[0].astype(jnp.float32)
    d0_all = x - y
    C = d0_all.shape[0]

    acc = None
    for c in range(C):                             # static unroll (C == 3)
        d0 = d0_all[c]                             # (H, W)
        # lap(x) - lap(y) = d0 - G_H @ d0 @ G_W   (laplacian is linear)
        tmp = jnp.dot(gh, d0, preferred_element_type=jnp.float32,
                      precision=lax.Precision.HIGHEST)
        d = d0 - jnp.dot(tmp, gw, preferred_element_type=jnp.float32,
                         precision=lax.Precision.HIGHEST)
        term = jnp.sqrt(d * d + _EPS)              # Charbonnier map (H, W)
        acc = term if acc is None else acc + term

    # Per-batch partial row (summed over C and H); the wrapper does the final
    # sum, so no cross-grid accumulator is needed and the batch axis stays
    # fully parallel.
    o_ref[0] = jnp.sum(acc, axis=0, keepdims=True)  # (1, W)


def ms_edge_loss(output, gt):
    """MSEdgeLoss.forward for a single-tensor `output` (non-list branch)."""
    # TODO(synk): list-of-outputs multi-scale branch (F.interpolate pyramid) not implemented.
    assert output.shape == gt.shape and output.shape[1] == 3
    N, C, H, W = output.shape
    gh, gw = _laplacian_operators(H, W)

    # VMEM budget: double-buffered input tiles + resident operators + headroom.
    # TODO(synk): for large images add a halo'd row-tiling grid axis (v7x 64 MiB VMEM).
    tile_bytes = C * H * W * jnp.dtype(output.dtype).itemsize
    op_bytes = (H * H + W * W) * 4
    vmem_limit = int(min(max(16 << 20, 8 * (4 * tile_bytes + 2 * op_bytes)), 48 << 20))

    partial = pl.pallas_call(
        _edge_loss_kernel,
        out_shape=jax.ShapeDtypeStruct((N, 1, W), jnp.float32),
        grid_spec=pltpu.PrefetchScalarGridSpec(
            num_scalar_prefetch=0,
            grid=(N,),
            in_specs=[pl.BlockSpec((H, H), lambda b: (0, 0)),
                      pl.BlockSpec((W, W), lambda b: (0, 0)),
                      pl.BlockSpec((1, C, H, W), lambda b: (b, 0, 0, 0)),
                      pl.BlockSpec((1, C, H, W), lambda b: (b, 0, 0, 0))],
            out_specs=pl.BlockSpec((1, 1, W), lambda b: (b, 0, 0))),
        compiler_params=pltpu.CompilerParams(
            dimension_semantics=("parallel",),
            vmem_limit_bytes=vmem_limit),
    )(gh, gw, output, gt)
    return jnp.sum(partial)


def _reference(output, gt):
    """Pure-JAX reference mirroring the PyTorch module (NCHW, depthwise conv)."""
    k1 = jnp.array([0.05, 0.25, 0.4, 0.25, 0.05], jnp.float32)
    k2 = jnp.outer(k1, k1)
    C = output.shape[1]
    kern = jnp.tile(k2[None, None], (C, 1, 1, 1))  # (C, 1, 5, 5)

    def conv_gauss(img):
        img = jnp.pad(img, ((0, 0), (0, 0), (2, 2), (2, 2)), mode="edge")
        return lax.conv_general_dilated(
            img, kern, window_strides=(1, 1), padding="VALID",
            dimension_numbers=("NCHW", "OIHW", "NCHW"),
            feature_group_count=C, precision=lax.Precision.HIGHEST)

    def lap(cur):
        filtered = conv_gauss(cur)
        _, _, H, W = filtered.shape
        rows = lax.broadcasted_iota(jnp.int32, (H, W), 0)
        cols = lax.broadcasted_iota(jnp.int32, (H, W), 1)
        mask = (rows % 2 == 0) & (cols % 2 == 0)
        nf = jnp.where(mask[None, None], filtered * 4.0, 0.0)
        return cur - conv_gauss(nf)

    d = lap(output.astype(jnp.float32)) - lap(gt.astype(jnp.float32))
    return jnp.sum(jnp.sqrt(d * d + _EPS))


if __name__ == "__main__":
    key = jax.random.PRNGKey(0)
    kx, ky = jax.random.split(key)
    N, C, H, W = 2, 3, 16, 16          # EdgeLoss kernel is hard-wired to 3 channels
    x = jax.random.normal(kx, (N, C, H, W), jnp.float32)
    y = jax.random.normal(ky, (N, C, H, W), jnp.float32)

    loss = jax.block_until_ready(ms_edge_loss(x, y))
    ref = jax.block_until_ready(_reference(x, y))

    assert jnp.allclose(loss, ref, rtol=1e-3, atol=1e-3), (loss, ref)
    print("KERNEL_OK")
</pallas_src>

<mosaic_0001>
module attributes {stable_mosaic.version = 11 : i64} {
  func.func @_edge_loss_kernel(%arg0: i32, %arg1: memref<16x16xf32, #tpu.memory_space<vmem>>, %arg2: memref<16x16xf32, #tpu.memory_space<vmem>>, %arg3: memref<1x3x16x16xf32, #tpu.memory_space<vmem>>, %arg4: memref<1x3x16x16xf32, #tpu.memory_space<vmem>>, %arg5: memref<1x1x16xf32, #tpu.memory_space<vmem>>) attributes {dimension_semantics = [#tpu.dimension_semantics<parallel>], iteration_bounds = array<i64: 2>, scalar_prefetch = 0 : i64, scratch_operands = 0 : i64, tpu.core_type = #tpu.core_type<tc>, window_params = [{pipeline_mode = #tpu.pipeline_mode<synchronous>, transform_indices = @transform_0, window_bounds = array<i64: 16, 16>}, {pipeline_mode = #tpu.pipeline_mode<synchronous>, transform_indices = @transform_1, window_bounds = array<i64: 16, 16>}, {transform_indices = @transform_2, window_bounds = array<i64: 1, 3, 16, 16>}, {transform_indices = @transform_3, window_bounds = array<i64: 1, 3, 16, 16>}, {transform_indices = @transform_4, window_bounds = array<i64: 1, 1, 16>}]} {
    %c0 = arith.constant 0 : index
    %c0_0 = arith.constant 0 : index
    %0 = vector.load %arg1[%c0, %c0_0] : memref<16x16xf32, #tpu.memory_space<vmem>>, vector<16x16xf32>
    %c0_1 = arith.constant 0 : index
    %c0_2 = arith.constant 0 : index
    %1 = vector.load %arg2[%c0_1, %c0_2] : memref<16x16xf32, #tpu.memory_space<vmem>>, vector<16x16xf32>
    %c0_3 = arith.constant 0 : index
    %c0_4 = arith.constant 0 : index
    %c0_5 = arith.constant 0 : index
    %c0_6 = arith.constant 0 : index
    %2 = vector.load %arg3[%c0_3, %c0_4, %c0_5, %c0_6] : memref<1x3x16x16xf32, #tpu.memory_space<vmem>>, vector<1x3x16x16xf32>
    %3 = vector.shape_cast %2 : vector<1x3x16x16xf32> to vector<3x16x16xf32>
    %c0_7 = arith.constant 0 : index
    %c0_8 = arith.constant 0 : index
    %c0_9 = arith.constant 0 : index
    %c0_10 = arith.constant 0 : index
    %4 = vector.load %arg4[%c0_7, %c0_8, %c0_9, %c0_10] : memref<1x3x16x16xf32, #tpu.memory_space<vmem>>, vector<1x3x16x16xf32>
    %5 = vector.shape_cast %4 : vector<1x3x16x16xf32> to vector<3x16x16xf32>
    %6 = arith.subf %3, %5 : vector<3x16x16xf32>
    %7 = vector.extract_strided_slice %6 {offsets = [0, 0, 0], sizes = [1, 16, 16], strides = [1, 1, 1]} : vector<3x16x16xf32> to vector<1x16x16xf32>
    %8 = vector.shape_cast %7 : vector<1x16x16xf32> to vector<16x16xf32>
    %cst = arith.constant dense<0.000000e+00> : vector<16x16xf32>
    %9 = tpu.matmul %0, %8, %cst {dimension_numbers = #tpu.dot_dimension_numbers<[1], [0], [0], [1], [0, 0, 1, 1], [], []>, precision = #tpu.contract_precision<fp32>} : vector<16x16xf32>, vector<16x16xf32>, vector<16x16xf32> -> vector<16x16xf32>
    %cst_11 = arith.constant dense<0.000000e+00> : vector<16x16xf32>
    %10 = tpu.matmul %9, %1, %cst_11 {dimension_numbers = #tpu.dot_dimension_numbers<[1], [0], [0], [1], [0, 0, 1, 1], [], []>, precision = #tpu.contract_precision<fp32>} : vector<16x16xf32>, vector<16x16xf32>, vector<16x16xf32> -> vector<16x16xf32>
    %11 = arith.subf %8, %10 : vector<16x16xf32>
    %12 = arith.mulf %11, %11 : vector<16x16xf32>
    %cst_12 = arith.constant 9.99999997E-7 : f32
    %13 = vector.broadcast %cst_12 : f32 to vector<16x16xf32>
    %14 = arith.addf %12, %13 : vector<16x16xf32>
    %15 = math.sqrt %14 : vector<16x16xf32>
    %16 = vector.extract_strided_slice %6 {offsets = [1, 0, 0], sizes = [1, 16, 16], strides = [1, 1, 1]} : vector<3x16x16xf32> to vector<1x16x16xf32>
    %17 = vector.shape_cast %16 : vector<1x16x16xf32> to vector<16x16xf32>
    %cst_13 = arith.constant dense<0.000000e+00> : vector<16x16xf32>
    %18 = tpu.matmul %0, %17, %cst_13 {dimension_numbers = #tpu.dot_dimension_numbers<[1], [0], [0], [1], [0, 0, 1, 1], [], []>, precision = #tpu.contract_precision<fp32>} : vector<16x16xf32>, vector<16x16xf32>, vector<16x16xf32> -> vector<16x16xf32>
    %cst_14 = arith.constant dense<0.000000e+00> : vector<16x16xf32>
    %19 = tpu.matmul %18, %1, %cst_14 {dimension_numbers = #tpu.dot_dimension_numbers<[1], [0], [0], [1], [0, 0, 1, 1], [], []>, precision = #tpu.contract_precision<fp32>} : vector<16x16xf32>, vector<16x16xf32>, vector<16x16xf32> -> vector<16x16xf32>
    %20 = arith.subf %17, %19 : vector<16x16xf32>
    %21 = arith.mulf %20, %20 : vector<16x16xf32>
    %cst_15 = arith.constant 9.99999997E-7 : f32
    %22 = vector.broadcast %cst_15 : f32 to vector<16x16xf32>
    %23 = arith.addf %21, %22 : vector<16x16xf32>
    %24 = math.sqrt %23 : vector<16x16xf32>
    %25 = arith.addf %15, %24 : vector<16x16xf32>
    %26 = vector.extract_strided_slice %6 {offsets = [2, 0, 0], sizes = [1, 16, 16], strides = [1, 1, 1]} : vector<3x16x16xf32> to vector<1x16x16xf32>
    %27 = vector.shape_cast %26 : vector<1x16x16xf32> to vector<16x16xf32>
    %cst_16 = arith.constant dense<0.000000e+00> : vector<16x16xf32>
    %28 = tpu.matmul %0, %27, %cst_16 {dimension_numbers = #tpu.dot_dimension_numbers<[1], [0], [0], [1], [0, 0, 1, 1], [], []>, precision = #tpu.contract_precision<fp32>} : vector<16x16xf32>, vector<16x16xf32>, vector<16x16xf32> -> vector<16x16xf32>
    %cst_17 = arith.constant dense<0.000000e+00> : vector<16x16xf32>
    %29 = tpu.matmul %28, %1, %cst_17 {dimension_numbers = #tpu.dot_dimension_numbers<[1], [0], [0], [1], [0, 0, 1, 1], [], []>, precision = #tpu.contract_precision<fp32>} : vector<16x16xf32>, vector<16x16xf32>, vector<16x16xf32> -> vector<16x16xf32>
    %30 = arith.subf %27, %29 : vector<16x16xf32>
    %31 = arith.mulf %30, %30 : vector<16x16xf32>
    %cst_18 = arith.constant 9.99999997E-7 : f32
    %32 = vector.broadcast %cst_18 : f32 to vector<16x16xf32>
    %33 = arith.addf %31, %32 : vector<16x16xf32>
    %34 = math.sqrt %33 : vector<16x16xf32>
    %35 = arith.addf %25, %34 : vector<16x16xf32>
    %cst_19 = arith.constant dense<0.000000e+00> : vector<16xf32>
    %36 = vector.multi_reduction <add>, %35, %cst_19 [0] : vector<16x16xf32> to vector<16xf32>
    %37 = vector.shape_cast %36 : vector<16xf32> to vector<1x16xf32>
    %c0_20 = arith.constant 0 : index
    %c0_21 = arith.constant 0 : index
    %c0_22 = arith.constant 0 : index
    %38 = vector.load %arg5[%c0_20, %c0_21, %c0_22] : memref<1x1x16xf32, #tpu.memory_space<vmem>>, vector<1x1x16xf32>
    %39 = vector.shape_cast %38 : vector<1x1x16xf32> to vector<1x16xf32>
    %40 = vector.shape_cast %37 : vector<1x16xf32> to vector<1x1x16xf32>
    tpu.vector_store %arg5[%c0_20, %c0_21, %c0_22], %40 {strides = array<i32>} : memref<1x1x16xf32, #tpu.memory_space<vmem>>, vector<1x1x16xf32>,
    return
  }
  func.func @transform_0(%arg0: i32) -> (i32, i32) {
    %c0_i32 = arith.constant 0 : i32
    %c0_i32_0 = arith.constant 0 : i32
    %c0_i32_1 = arith.constant 0 : i32
    return %c0_i32, %c0_i32_0 : i32, i32
  }
  func.func @transform_1(%arg0: i32) -> (i32, i32) {
    %c0_i32 = arith.constant 0 : i32
    %c0_i32_0 = arith.constant 0 : i32
    %c0_i32_1 = arith.constant 0 : i32
    return %c0_i32, %c0_i32_0 : i32, i32
  }
  func.func @transform_2(%arg0: i32) -> (i32, i32, i32, i32) {
    %c0_i32 = arith.constant 0 : i32
    %c0_i32_0 = arith.constant 0 : i32
    %c0_i32_1 = arith.constant 0 : i32
    %c0_i32_2 = arith.constant 0 : i32
    return %arg0, %c0_i32, %c0_i32_0, %c0_i32_1 : i32, i32, i32, i32
  }
  func.func @transform_3(%arg0: i32) -> (i32, i32, i32, i32) {
    %c0_i32 = arith.constant 0 : i32
    %c0_i32_0 = arith.constant 0 : i32
    %c0_i32_1 = arith.constant 0 : i32
    %c0_i32_2 = arith.constant 0 : i32
    return %arg0, %c0_i32, %c0_i32_0, %c0_i32_1 : i32, i32, i32, i32
  }
  func.func @transform_4(%arg0: i32) -> (i32, i32, i32) {
    %c0_i32 = arith.constant 0 : i32
    %c0_i32_0 = arith.constant 0 : i32
    %c0_i32_1 = arith.constant 0 : i32
    return %arg0, %c0_i32, %c0_i32_0 : i32, i32, i32
  }
}

</mosaic_0001>

<bundles_post_ra>
// kernel: tpu_custom_call.1
= control target key start
LH: loop header
LB: loop body
LE: loop exit
PB: predicated region body
PF: predicated region fallthrough
CT: control target
= control target key end

     0   :  { %s4910_s0 = inlined_call_operand.hbm [shape: f32[16,16], index: 0, kind: input, shape index: {}]   ;;  %s4911_s1 = inlined_call_operand.hbm [shape: f32[16,16], index: 1, kind: input, shape index: {}]   ;;  %s4912_s2 = inlined_call_operand.hbm [shape: f32[2,3,16,16], index: 2, kind: input, shape index: {}]   ;;  %s4913_s3 = inlined_call_operand.hbm [shape: f32[2,3,16,16], index: 3, kind: input, shape index: {}]   ;;  %s4914_s4 = inlined_call_operand.hbm [shape: f32[2,1,16], index: 4, kind: output, shape index: {}]  }
   0x1   :  { %4923 = sst [smem:[#allocation14_spill]] %s4910_s0 }
   0x2   :  { %9 = vsyncpa [#allocation3], 0 }
   0x3   :  { %10 = vsyncpa [#allocation6], 0 }
   0x4   :  { %11 = vsyncpa [#allocation4], 0 }
   0x5   :  { %13 = vsyncpa [#allocation4 + $0x1], 0  ;;  %s4459_s15 = smov 0   ;;  %s4461_s16 = smov 0  }
   0x6   :  { %s4463_s17 = smov 0   ;;  %s4465_s18 = smov 0  }
   0x7 LB: > { %s4480_s19 = sadd.s32 4294967295, %s4425_s18   ;;  %s3531_s20 = sadd.s32 4294967294, %s4425_s18   ;;  %s4425_s18 = sphi %s4465_s18, %s4951_s18   ;;  %s4421_s17 = sphi %s4463_s17, %s4950_s17   ;;  %s4417_s16 = sphi %s4461_s16, %s4949_s16   ;;  %s4413_s15 = sphi %s4459_s15, %s4948_s15  }
   0x8   : > { %s4484_s21 = sadd.s32 1, %s4425_s18   ;;  %s68_s22 = sadd.s32 1, %s4421_s17 }
   0x9   : > { %s65_s23 = ssub.s32 %s4425_s18, %s4484_s21  ;;  %p75_p0 = scmp.ne.s32.totalorder %s4421_s17, %s4417_s16 }
   0xa   : > { %p66_p1 = scmp.eq.s32.totalorder %s65_s23, 0  ;;  %p76_p2 = scmp.eq.s32.totalorder %s4425_s18, 0 }
   0xb   : > { %p81_p3 = scmp.ne.s32.totalorder %s4417_s16, %s4413_s15  ;;  %p4915_p4 = scmp.eq.s32.totalorder %s4480_s19, 0 }
   0xc   : > { %s4496_s24 = scalar_select %p66_p1, %s4421_s17, %s68_s22  }
   0xd   : > { %p4498_p5 = por %p76_p2, %p75_p0  ;;  %p4504_p6 = por %p4915_p4, %p81_p3 }
   0xe   : > { %p131_p7 = scmp.eq.s32.totalorder %s4480_s19, 1  ;;  %p137_p8 = scmp.eq.s32.totalorder %s3531_s20, 1 }
   0xf   : > { %s4924_s25 = scalar_select %p4498_p5, 1, 0 }
  0x10   : > { %s4925_s26 = scalar_select %p4504_p6, 1, 0 }
  0x11   : > { %p3532_p9 = scmp.ge.s32.totalorder %s4425_s18, 1  ;;  %p144_p10 = scmp.lt.s32.totalorder %s4425_s18, 3 }
  0x12   : > { %p4511_p11 = por %p131_p7, %p75_p0  ;;  %p4515_p12 = por %p137_p8, %p81_p3 }
  0x13   : > { %p4519_p13 = pnand %p3532_p9, %p144_p10  ;;  %s4427_s30 = smov [#allocation2]  }
  0x14   : > { %s4926_s27 = scalar_select %p4511_p11, 1, 0 }
  0x15   : > { %s4927_s28 = scalar_select %p4515_p12, 1, 0 }
  0x16   : > { %s4928_s29 = scalar_select %p4519_p13, 1, 0 }
  0x17   : > { %p4163_p1 = pneg %p4519_p13  ;;  %s156_s5 = sshll.u32 %s4427_s30, 4  ;;  %s157_s5 = int_to_ptr.vmem [resolvable:$true] %s156_s5 }
  0x18   : > { %s4930_s0 = sld [smem:[#allocation14_spill]] }
  0x19   : > { %p4527_p2 = pnand %p4163_p1, %p4915_p4 }
  0x1b   : > { %p4922_p8 = pneg %p4527_p2 }
  0x1e   : > { %s4235_s10 = scalar_lea.hbm %s4930_s0, 256 }
  0x1f   : > { %p4236_p7 = scmp.ne.s32.totalorder %s4930_s0, %s4235_s10  ;;  %p4242_p1 = scmp.lt.u32.totalorder %s4235_s10, %s4930_s0 }
  0x21   : > { %p4238_p9 = pnand %p4922_p8, %p4236_p7 }
  0x23   : > { %p4239_p10 = pneg %p4238_p9 }
  0x25   : > { %p4244_p0 = pnand %p4242_p1, %p4239_p10 }
  0x27   : > { %4247 = shalt.err (!%p4244_p0)
}
  0x28   : > { %s4248_s20 = scalar_lea.vmem %s157_s5, 256  ;;  %p4256_p11 = scmp.lt.s32.totalorder %s157_s5, %s157_s5 }
  0x29   : > { %p4249_p4 = scmp.ne.s32.totalorder %s157_s5, %s4248_s20  ;;  %p4257_p6 = scmp.lt.s32.totalorder %s4248_s20, %s4248_s20 }
  0x2b   : > { %p4251_p3 = pnand %p4249_p4, %p4922_p8  ;;  %p4258_p13 = por %p4257_p6, %p4256_p11 }
  0x2d   : > { %p4252_p12 = pneg %p4251_p3 }
  0x2f   : > { %p4259_p5 = pnand %p4258_p13, %p4252_p12 }
  0x31   : > { %4262 = shalt.err (!%p4259_p5)
}
  0x32   : > { %s4920_s22 = smov 128   ;;  %s4429_s23 = smov 8  }
  0x33   : > { %4166 = dma.hbm_to_vmem [thread:$0]  (!%p4527_p2), %s4930_s0, 256, %s157_s5, [#allocation3], %s4920_s22, %s4920_s22, %s4429_s23  }
  0x34   : > { %p4931_p4 = scmp.ne.s32.totalorder %s4924_s25, 0  ;;  %p4932_p6 = scmp.lt.s32.totalorder %s4425_s18, 2 }
  0x35   : > { %s185_s10 = sand.u32 1, %s4421_s17   ;;  %s4919_s12 = smul.u32 768, %s4425_s18 }
  0x36   : > { %p4563_p5 = pnand %p4932_p6, %p4931_p4  ;;  %s4568_s11 = smul.u32 48, %s185_s10 }
  0x37   : > { %s4430_s13 = smov [#allocation5]   ;;  %s4576_s5 = scalar_lea.hbm %s4912_s2, %s4919_s12 }
  0x38   : > { %s169_s14 = sshll.u32 %s4430_s13, 4  ;;  %s187_s25 = scalar_lea.vmem [#allocation7], %s4568_s11  ;;  %s4581_s14 = int_to_ptr.vmem [resolvable:$true] %s169_s14 }
  0x39   : > { %s194_s30 = sshll.u32 %s187_s25, 4  ;;  %s4934_s8 = sand.u32 1, %s4425_s18   ;;  %s4579_s30 = int_to_ptr.vmem [resolvable:$true] %s194_s30 }
  0x3a   : > { %s4585_s10 = scalar_lea.sflag [#allocation3], %s4934_s8  ;;  %s4263_s13 = scalar_lea.hbm %s4576_s5, 768 }
  0x3b   : > { %p4264_p11 = scmp.ne.s32.totalorder %s4576_s5, %s4263_s13  ;;  %p4265_p12 = pneg %p4563_p5 }
  0x3c   : > { %s4268_s12 = scalar_lea.hbm %s4912_s2, 1536  ;;  %p4269_p3 = scmp.lt.u32.totalorder %s4576_s5, %s4912_s2 }
  0x3d   : > { %p4266_p13 = pnand %p4265_p12, %p4264_p11  ;;  %p4270_p7 = scmp.lt.u32.totalorder %s4268_s12, %s4263_s13 }
  0x3e   : > { %p4272_p10 = scmp.lt.u32.totalorder %s4263_s13, %s4576_s5 }
  0x3f   : > { %p4267_p0 = pneg %p4266_p13  ;;  %p4271_p9 = por %p4270_p7, %p4269_p3 }
  0x41   : > { %p4273_p1 = por %p4272_p10, %p4271_p9 }
  0x43   : > { %p4274_p4 = pnand %p4273_p1, %p4267_p0 }
  0x45   : > { %4277 = shalt.err (!%p4274_p4)
}
  0x46   : > { %s4278_s8 = scalar_lea.vmem %s4579_s30, 768  ;;  %s4431_s7 = smov [#allocation7]  }
  0x47   : > { %p4279_p6 = scmp.ne.s32.totalorder %s4579_s30, %s4278_s8  ;;  %s4283_s20 = sshll.u32 %s4431_s7, 4  ;;  %s4284_s20 = int_to_ptr.vmem [resolvable:$false] %s4283_s20 }
  0x48   : > { %s4285_s22 = scalar_lea.vmem %s4284_s20, 1536  ;;  %p4286_p8 = scmp.lt.s32.totalorder %s4579_s30, %s4284_s20 }
  0x49   : > { %p4281_p11 = pnand %p4279_p6, %p4265_p12  ;;  %p4287_p3 = scmp.lt.s32.totalorder %s4285_s22, %s4278_s8 }
  0x4b   : > { %p4282_p13 = pneg %p4281_p11  ;;  %p4288_p7 = por %p4287_p3, %p4286_p8 }
  0x4d   : > { %p4289_p9 = pnand %p4288_p7, %p4282_p13 }
  0x4f   : > { %4292 = shalt.err (!%p4289_p9)
}
  0x50   : > { %s4935_s12 = smov 128   ;;  %s4293_s7 = scalar_lea.hbm %s4911_s1, 256 }
  0x51   : > { %4173 = dma.hbm_to_vmem [thread:$0]  (!%p4563_p5), %s4576_s5, 768, %s4579_s30, %s4585_s10, %s4935_s12, %s4935_s12, %s4429_s23  }
  0x52   : > { %p4294_p8 = scmp.ne.s32.totalorder %s4911_s1, %s4293_s7  ;;  %p4936_p0 = pneg %p4527_p2 }
  0x53   : > { %p4300_p4 = scmp.lt.u32.totalorder %s4293_s7, %s4911_s1 }
  0x54   : > { %p4296_p10 = pnand %p4294_p8, %p4936_p0 }
  0x56   : > { %p4297_p1 = pneg %p4296_p10 }
  0x58   : > { %p4302_p6 = pnand %p4300_p4, %p4297_p1 }
  0x5a   : > { %4305 = shalt.err (!%p4302_p6)
}
  0x5b   : > { %s4306_s5 = scalar_lea.vmem %s4581_s14, 256  ;;  %p4937_p13 = pmov %p4936_p0 }
  0x5c   : > { %p4307_p11 = scmp.ne.s32.totalorder %s4581_s14, %s4306_s5  ;;  %p4314_p9 = scmp.lt.s32.totalorder %s4581_s14, %s4581_s14 }
  0x5d   : > { %p4315_p8 = scmp.lt.s32.totalorder %s4306_s5, %s4306_s5 }
  0x5e   : > { %p4309_p3 = pnand %p4307_p11, %p4937_p13 }
  0x5f   : > { %p4316_p0 = por %p4315_p8, %p4314_p9 }
  0x60   : > { %p4310_p7 = pneg %p4309_p3 }
  0x62   : > { %p4317_p10 = pnand %p4316_p0, %p4310_p7 }
  0x64   : > { %4320 = shalt.err (!%p4317_p10)
}
  0x65   : > { %4169 = dma.hbm_to_vmem [thread:$0]  (!%p4527_p2), %s4911_s1, 256, %s4581_s14, [#allocation6], %s4935_s12, %s4935_s12, %s4429_s23  }
  0x66   : > { %s4938_s13 = smul.u32 768, %s4425_s18  ;;  %s208_s6 = scalar_lea.vmem [#allocation8], %s4568_s11 }
  0x67   : > { %s215_s8 = sshll.u32 %s208_s6, 4  ;;  %s4326_s0 = scalar_lea.hbm %s4913_s3, 1536  ;;  %s4652_s8 = int_to_ptr.vmem [resolvable:$true] %s215_s8 }
  0x68   : > { %s4649_s20 = scalar_lea.hbm %s4913_s3, %s4938_s13 }
  0x69   : > { %s4321_s22 = scalar_lea.hbm %s4649_s20, 768  ;;  %p4327_p6 = scmp.lt.u32.totalorder %s4649_s20, %s4913_s3 }
  0x6a   : > { %p4322_p1 = scmp.ne.s32.totalorder %s4649_s20, %s4321_s22  ;;  %p4328_p11 = scmp.lt.u32.totalorder %s4326_s0, %s4321_s22 }
  0x6b   : > { %p4330_p3 = scmp.lt.u32.totalorder %s4321_s22, %s4649_s20 }
  0x6c   : > { %p4324_p4 = pnand %p4322_p1, %p4265_p12  ;;  %p4329_p13 = por %p4328_p11, %p4327_p6 }
  0x6e   : > { %p4325_p2 = pneg %p4324_p4  ;;  %p4331_p7 = por %p4330_p3, %p4329_p13 }
  0x70   : > { %p4332_p9 = pnand %p4331_p7, %p4325_p2 }
  0x72   : > { %4335 = shalt.err (!%p4332_p9)
}
  0x73   : > { %s4336_s11 = scalar_lea.vmem %s4652_s8, 768  ;;  %s4432_s25 = smov [#allocation8]  }
  0x74   : > { %p4337_p8 = scmp.ne.s32.totalorder %s4652_s8, %s4336_s11  ;;  %s4341_s7 = sshll.u32 %s4432_s25, 4  ;;  %s4342_s7 = int_to_ptr.vmem [resolvable:$false] %s4341_s7 }
  0x75   : > { %s4343_s6 = scalar_lea.vmem %s4342_s7, 1536  ;;  %p4344_p1 = scmp.lt.s32.totalorder %s4652_s8, %s4342_s7 }
  0x76   : > { %p4339_p0 = pnand %p4337_p8, %p4265_p12  ;;  %p4345_p4 = scmp.lt.s32.totalorder %s4343_s6, %s4336_s11 }
  0x78   : > { %p4340_p10 = pneg %p4339_p0  ;;  %p4346_p6 = por %p4345_p4, %p4344_p1 }
  0x7a   : > { %p4347_p11 = pnand %p4346_p6, %p4340_p10 }
  0x7c   : > { %4350 = shalt.err (!%p4347_p11)
}
  0x7d   : > { %4176 = dma.hbm_to_vmem [thread:$0]  (!%p4563_p5), %s4649_s20, 768, %s4652_s8, %s4585_s10, %s4935_s12, %s4935_s12, %s4429_s23  }
  0x7e   : > { %p4939_p12 = scmp.ne.s32.totalorder %s4928_s29, 0 }
  0x7f   : > { %p4940_p2 = scmp.eq.s32.totalorder (!%p4939_p12), %s4480_s19, 0 }
  0x80   : > { %227 = sbr.rel (%p4939_p12) target bundleno = 817 (0x331), region = 36 }
  0x87   : > { %4396 = dma.done.wait (%p4940_p2), [#allocation3], 256   ;;  %p4941_p13 = pmov %p4940_p2 }
  0x88   : > { %p4942_p3 = pmov %p4940_p2 }
  0x89   : > { %4398 = vsyncadd (%p4941_p13), [#allocation3], 4294967040 }
  0x8a   : > { %4400 = dma.done.wait (%p4942_p3), [#allocation6], 256   ;;  %p4943_p7 = pmov %p4940_p2 }
  0x8b   : > { %s237_s9 = sand.u32 1, %s4480_s19   ;;  %s4693_s23 = sand.u32 1, %s4417_s16  }
  0x8c   : > { %4402 = vsyncadd (%p4943_p7), [#allocation6], 4294967040  ;;  %s4148_s29 = smul.u32 48, %s4693_s23  ;;  %s238_s10 = scalar_lea.sflag [#allocation3], %s237_s9 }
  0x8d   : > { %p4944_p5 = scmp.ne.s32.totalorder %s4925_s26, 0 }
  0x8e   : > { %s4696_s12 = scalar_lea.vmem [#allocation7], %s4148_s29 }
  0x8f   : > { %4404 = dma.done.wait (%p4944_p5), %s238_s10, 1536  }
  0x90   : > { %4406 = vsyncadd (%p4944_p5), %s238_s10, 4294965760  ;;  %vm301_vm0 = vcmask 130048   ;;  %v283_v0 = vld [vmem:[%s4696_s12] sm:$0xff]  ;;  %v284_v1 = vld [vmem:[%s4696_s12 + $0x8] sm:$0xff]  ;;  %s4704_s20 = scalar_lea.vmem [#allocation8], %s4148_s29  ;;  %s3541_s26 = sshll.u32 %s4480_s19, 4 }
  0x91   : > { %v289_v2 = vld [vmem:[%s4704_s20] sm:$0xff]  ;;  %v290_v3 = vld [vmem:[%s4704_s20 + $0x8] sm:$0xff]  ;;  %v285_v33 = vld [vmem:[%s4696_s12 + $0x10] sm:$0xff]  ;;  %s278_s8 = scalar_lea.vmem [#allocation9], %s4693_s23  ;;  %vm3411_vm13 = vcmask 122880   ;;  %s4866_s0 = scalar_lea.hbm %s4914_s4, %s3541_s26 }
  0x92   : > { %v4708_v4 = vsub.f32 %v283_v0, %v289_v2  ;;  %v279_v5 = vld [vmem:[#allocation2] sm:$0xff]  ;;  %v280_v6 = vld [vmem:[#allocation2 + $0x8] sm:$0xff]  ;;  %v4710_v7 = vsub.f32 %v284_v1, %v290_v3  ;;  %s3426_s22 = sshll.u32 %s278_s8, 4  ;;  %s3414_s30 = scalar_lea.sflag [#allocation4], %s4693_s23  ;;  %s4868_s22 = int_to_ptr.vmem [resolvable:$true] %s3426_s22 }
  0x93   : > { %v303_v8 = vsel %vm301_vm0, %v279_v5, 0  ;;  %v306_v9 = vsel %vm301_vm0, %v280_v6, 0  ;;  %v286_v34 = vld [vmem:[%s4696_s12 + $0x18] sm:$0xff]  ;;  %v291_v35 = vld [vmem:[%s4704_s20 + $0x10] sm:$0xff]  ;;  %v287_v53 = vld [vmem:[%s4696_s12 + $0x20] sm:$0xff]  ;;  %s4351_s13 = scalar_lea.vmem %s4868_s22, 16 }
  0x94   : > { %v309_v10 = vand.u32 4294901760, %v4708_v4  ;;  %v4715_v11 = vand.u32 4294901760, %v303_v8  ;;  %v4717_v12 = vand.u32 4294901760, %v306_v9  ;;  %v312_v13 = vand.u32 4294901760, %v4710_v7  ;;  %v292_v36 = vld [vmem:[%s4704_s20 + $0x18] sm:$0xff]  ;;  %v288_v54 = vld [vmem:[%s4696_s12 + $0x28] sm:$0xff]  ;;  %p4352_p9 = scmp.ne.s32.totalorder %s4868_s22, %s4351_s13 }
  0x95   : > { %v4751_v38 = vsub.f32 %v285_v33, %v291_v35  ;;  %v4753_v39 = vsub.f32 %v286_v34, %v292_v36  ;;  %v293_v55 = vld [vmem:[%s4704_s20 + $0x20] sm:$0xff]  ;;  %v294_v56 = vld [vmem:[%s4704_s20 + $0x28] sm:$0xff]  ;;  %p4945_p8 = scmp.ne.s32.totalorder %s4926_s27, 0  ;;  %s4433_s19 = smov [#allocation9]  }
  0x96   : > { %v4721_v14 = vsub.f32 %v303_v8, %v4715_v11  ;;  %v4724_v15 = vsub.f32 %v306_v9, %v4717_v12  ;;  %v397_v16 = vsub.f32 %v4708_v4, %v309_v10  ;;  %v3940_v17 = vpack.c.bf16 %v312_v13, %v309_v10  ;;  %s4355_s11 = sshll.u32 %s4433_s19, 4  ;;  %s4356_s11 = int_to_ptr.vmem [resolvable:$false] %s4355_s11 }
  0x97   : > { %v404_v18 = vsub.f32 %v4710_v7, %v312_v13  ;;  %v1339_v40 = vand.u32 4294901760, %v4751_v38  ;;  %v1342_v41 = vand.u32 4294901760, %v4753_v39  ;;  %v4775_v58 = vsub.f32 %v287_v53, %v293_v55  ;;  %p4353_p0 = pnand %p4352_p9, %p4945_p8  ;;  %s4357_s25 = scalar_lea.vmem %s4356_s11, 32 }
  0x98   : > { %v4729_v19 = vand.u32 4294901760, %v4721_v14  ;;  %v4732_v20 = vand.u32 4294901760, %v4724_v15  ;;  %v398_v21 = vand.u32 4294901760, %v397_v16  ;;  %3941 = vmatprep.subr.bf16.mxu0 %v3940_v17  ;;  %v4777_v59 = vsub.f32 %v288_v54, %v294_v56  ;;  %p4358_p1 = scmp.lt.s32.totalorder %s4868_s22, %s4356_s11  ;;  %p4359_p4 = scmp.lt.s32.totalorder %s4357_s25, %s4351_s13 }
  0x99   : > { %v405_v22 = vand.u32 4294901760, %v404_v18  ;;  %3943 = vmatpush3.bf16.msra.mxu0 %v3940_v17  ;;  %v3948_v32 = vpack.c.bf16 %v404_v18, %v397_v16  ;;  %v1427_v42 = vsub.f32 %v4751_v38, %v1339_v40  ;;  %v1434_v43 = vsub.f32 %v4753_v39, %v1342_v41  ;;  %p4354_p10 = pneg %p4353_p0 }
  0x9a   : > { %v378_v23 = vsub.f32 %v4721_v14, %v4729_v19  ;;  %v388_v24 = vsub.f32 %v4724_v15, %v4732_v20  ;;  %v399_v25 = vsub.f32 %v397_v16, %v398_v21  ;;  %v3988_v46 = vpack.c.bf16 %v1342_v41, %v1339_v40  ;;  %v282_v16 = vld [vmem:[#allocation5 + $0x8] sm:$0xff]  ;;  %p4360_p6 = por %p4359_p4, %p4358_p1 }
  0x9b   : > { %v406_v26 = vsub.f32 %v404_v18, %v405_v22  ;;  %v3956_v37 = vpack.c.bf16 %v405_v22, %v398_v21  ;;  %v1428_v44 = vand.u32 4294901760, %v1427_v42  ;;  %v1435_v45 = vand.u32 4294901760, %v1434_v43 }
  0x9c   : > { %v4738_v27 = vand.u32 4294901760, %v378_v23  ;;  %v4740_v28 = vand.u32 4294901760, %v388_v24  ;;  %v400_v29 = vand.u32 4294901760, %v399_v25  ;;  %v3996_v52 = vpack.c.bf16 %v1434_v43, %v1427_v42  ;;  %p4361_p11 = pnand %p4360_p6, %p4354_p10 }
  0x9d   : > { %v407_v30 = vand.u32 4294901760, %v406_v26  ;;  %v1429_v47 = vsub.f32 %v1427_v42, %v1428_v44  ;;  %v1436_v48 = vsub.f32 %v1434_v43, %v1435_v45  ;;  %v4004_v57 = vpack.c.bf16 %v1435_v45, %v1428_v44 }
  0x9e   : > { %3692 = vmatprep.mubr.f32.mxu0 %v4738_v27  ;;  %v2371_v60 = vand.u32 4294901760, %v4775_v58  ;;  %v2374_v61 = vand.u32 4294901760, %v4777_v59 }
  0x9f   : > { %3693 = vmatmul.mubr.f32.vlgmr.msra.gmra.mrb[0].mxu0 %v4740_v28  ;;  %v3944_v31 = vpack.c.bf16 %v407_v30, %v400_v29  ;;  %v1430_v49 = vand.u32 4294901760, %v1429_v47  ;;  %v1437_v50 = vand.u32 4294901760, %v1436_v48 }
  0xa0   : > { %3699 = vmatprep.mubr.f32.mxu0 %v4715_v11  ;;  %v2459_v62 = vsub.f32 %v4775_v58, %v2371_v60  ;;  %v2466_v63 = vsub.f32 %v4777_v59, %v2374_v61  ;;  %v4036_v2 = vpack.c.bf16 %v2374_v61, %v2371_v60 }
  0xa1   : > { %3945 = vmatprep.subr.bf16.mxu0 %v3944_v31  ;;  %v3992_v51 = vpack.c.bf16 %v1437_v50, %v1430_v49 }
  0xa2   : > { %3947 = vmatpush3.bf16.msra.mxu0 %v3944_v31  ;;  %v2460_v0 = vand.u32 4294901760, %v2459_v62  ;;  %v2467_v1 = vand.u32 4294901760, %v2466_v63  ;;  %v4044_v10 = vpack.c.bf16 %v2466_v63, %v2459_v62 }
  0xa3   : > { %3949 = vmatprep.subr.bf16.mxu0 %v3948_v32 }
  0xa4   : > { %v2461_v3 = vsub.f32 %v2459_v62, %v2460_v0  ;;  %v2468_v5 = vsub.f32 %v2466_v63, %v2467_v1  ;;  %v4052_v13 = vpack.c.bf16 %v2467_v1, %v2460_v0 }
  0xa6   : > { %v2462_v6 = vand.u32 4294901760, %v2461_v3  ;;  %v2469_v8 = vand.u32 4294901760, %v2468_v5 }
  0xa7   : > { %3700 = vmatmul.mubr.f32.vlgmr.msra.gmra.mrb[0].mxu0 %v4717_v12 }
  0xa8   : > { %3951 = vmatpush3.bf16.msra.mxu0 %v3948_v32  ;;  %3706 = vmatprep.mubr.f32.mxu0 %v4721_v14  ;;  %v4040_v9 = vpack.c.bf16 %v2469_v8, %v2462_v6 }
  0xa9   : > { %3953 = vmatprep.subr.bf16.mxu0 %v3940_v17 }
  0xaf   : > { %3707 = vmatmul.mubr.f32.vlgmr.msra.gmra.mrb[0].mxu0 %v4724_v15 }
  0xb0   : > { %3955 = vmatpush3.bf16.msra.mxu0 %v3940_v17  ;;  %3713 = vmatprep.mubr.f32.mxu0 %v4729_v19 }
  0xb1   : > { %3957 = vmatprep.subr.bf16.mxu0 %v3956_v37 }
  0xb7   : > { %3714 = vmatmul.mubr.f32.vlgmr.msra.gmra.mrb[0].mxu0 %v4732_v20 }
  0xb8   : > { %3959 = vmatpush3.bf16.msra.mxu0 %v3956_v37  ;;  %3720 = vmatprep.mubr.f32.mxu0 %v4715_v11 }
  0xb9   : > { %3961 = vmatprep.subr.bf16.mxu0 %v3940_v17 }
  0xbf   : > { %3721 = vmatmul.mubr.f32.vlgmr.msra.gmra.mrb[0].mxu0 %v4717_v12 }
  0xc0   : > { %3963 = vmatpush3.bf16.msra.mxu0 %v3940_v17  ;;  %3727 = vmatprep.mubr.f32.mxu0 %v4715_v11  ;;  %v820_v17 = vand.u32 4294901760, %v282_v16 }
  0xc1   : > { %3989 = vmatprep.subr.bf16.mxu0 %v3988_v46 }
  0xc2   : > { %v912_v21 = vsub.f32 %v282_v16, %v820_v17 }
  0xc4   : > { %v913_v22 = vand.u32 4294901760, %v912_v21 }
  0xc6   : > { %v914_v24 = vsub.f32 %v912_v21, %v913_v22 }
  0xc7   : > { %3728 = vmatmul.mubr.f32.vlgmr.msra.gmra.mrb[0].mxu0 %v4717_v12 }
  0xc8   : > { %3991 = vmatpush3.bf16.msra.mxu0 %v3988_v46  ;;  %3776 = vmatprep.mubr.f32.mxu0 %v4738_v27 }
  0xc9   : > { %3993 = vmatprep.subr.bf16.mxu0 %v3992_v51 }
  0xcb   : > { %3777 = vmatmul.mubr.f32.vlgmr.msra.gmra.mrb[2].mxu0 %v4740_v28 }
  0xcc   : > { %3995 = vmatpush3.bf16.msra.mxu0 %v3992_v51  ;;  %3783 = vmatprep.mubr.f32.mxu0 %v4715_v11 }
  0xcd   : > { %3997 = vmatprep.subr.bf16.mxu0 %v3996_v52 }
  0xd3   : > { %3784 = vmatmul.mubr.f32.vlgmr.msra.gmra.mrb[2].mxu0 %v4717_v12 }
  0xd4   : > { %3999 = vmatpush3.bf16.msra.mxu0 %v3996_v52  ;;  %3790 = vmatprep.mubr.f32.mxu0 %v4721_v14 }
  0xd5   : > { %4001 = vmatprep.subr.bf16.mxu0 %v3988_v46 }
  0xdb   : > { %3791 = vmatmul.mubr.f32.vlgmr.msra.gmra.mrb[2].mxu0 %v4724_v15 }
  0xdc   : > { %4003 = vmatpush3.bf16.msra.mxu0 %v3988_v46  ;;  %3797 = vmatprep.mubr.f32.mxu0 %v4729_v19 }
  0xdd   : > { %4005 = vmatprep.subr.bf16.mxu0 %v4004_v57 }
  0xe3   : > { %3798 = vmatmul.mubr.f32.vlgmr.msra.gmra.mrb[2].mxu0 %v4732_v20 }
  0xe4   : > { %4007 = vmatpush3.bf16.msra.mxu0 %v4004_v57  ;;  %3804 = vmatprep.mubr.f32.mxu0 %v4715_v11 }
  0xe5   : > { %4009 = vmatprep.subr.bf16.mxu0 %v3988_v46 }
  0xeb   : > { %3805 = vmatmul.mubr.f32.vlgmr.msra.gmra.mrb[2].mxu0 %v4717_v12 }
  0xec   : > { %4011 = vmatpush3.bf16.msra.mxu0 %v3988_v46  ;;  %3811 = vmatprep.mubr.f32.mxu0 %v4715_v11 }
  0xed   : > { %4037 = vmatprep.subr.bf16.mxu0 %v4036_v2 }
  0xf3   : > { %3812 = vmatmul.mubr.f32.vlgmr.msra.gmra.mrb[2].mxu0 %v4717_v12 }
  0xf4   : > { %4039 = vmatpush3.bf16.msra.mxu0 %v4036_v2  ;;  %3860 = vmatprep.mubr.f32.mxu0 %v4738_v27 }
  0xf5   : > { %4041 = vmatprep.subr.bf16.mxu0 %v4040_v9 }
  0xf7   : > { %3861 = vmatmul.mubr.f32.vlgmr.msra.gmra.mrb[4].mxu0 %v4740_v28 }
  0xf8   : > { %4043 = vmatpush3.bf16.msra.mxu0 %v4040_v9  ;;  %3867 = vmatprep.mubr.f32.mxu0 %v4715_v11 }
  0xf9   : > { %4045 = vmatprep.subr.bf16.mxu0 %v4044_v10 }
  0xff   : > { %3868 = vmatmul.mubr.f32.vlgmr.msra.gmra.mrb[4].mxu0 %v4717_v12 }
 0x100   : > { %4047 = vmatpush3.bf16.msra.mxu0 %v4044_v10  ;;  %3874 = vmatprep.mubr.f32.mxu0 %v4721_v14  ;;  %v281_v14 = vld [vmem:[#allocation5] sm:$0xff] }
 0x101   : > { %4049 = vmatprep.subr.bf16.mxu0 %v4036_v2 }
 0x107   : > { %3875 = vmatmul.mubr.f32.vlgmr.msra.gmra.mrb[4].mxu0 %v4724_v15  ;;  %v817_v15 = vand.u32 4294901760, %v281_v14 }
 0x108   : > { %4051 = vmatpush3.bf16.msra.mxu0 %v4036_v2  ;;  %3881 = vmatprep.mubr.f32.mxu0 %v4729_v19 }
 0x109   : > { %4053 = vmatprep.subr.bf16.mxu0 %v4052_v13  ;;  %v4802_v18 = vpack.c.bf16 %v820_v17, %v817_v15  ;;  %v905_v19 = vsub.f32 %v281_v14, %v817_v15 }
 0x10b   : > { %3965 = vmatprep.subr.bf16.mxu1 %v4802_v18 }
 0x10c   : > { %3967 = vmatpush3.bf16.msra.mxu1 %v4802_v18 }
 0x10f   : > { %3882 = vmatmul.mubr.f32.vlgmr.msra.gmra.mrb[4].mxu0 %v4732_v20  ;;  %v906_v20 = vand.u32 4294901760, %v905_v19 }
 0x110   : > { %4055 = vmatpush3.bf16.msra.mxu0 %v4052_v13  ;;  %3888 = vmatprep.mubr.f32.mxu0 %v4715_v11 }
 0x111   : > { %4057 = vmatprep.subr.bf16.mxu0 %v4036_v2  ;;  %v907_v23 = vsub.f32 %v905_v19, %v906_v20  ;;  %v4811_v27 = vpack.c.bf16 %v913_v22, %v906_v20 }
 0x113   : > { %v908_v25 = vand.u32 4294901760, %v907_v23 }
 0x117   : > { %3889 = vmatmul.mubr.f32.vlgmr.msra.gmra.mrb[4].mxu0 %v4717_v12 }
 0x118   : > { %4059 = vmatpush3.bf16.msra.mxu0 %v4036_v2  ;;  %3895 = vmatprep.mubr.f32.mxu0 %v4715_v11  ;;  %v915_v11 = vand.u32 4294901760, %v914_v24 }
 0x11a   : > { %v4806_v26 = vpack.c.bf16 %v915_v11, %v908_v25 }
 0x11c   : > { %3969 = vmatprep.subr.bf16.mxu1 %v4806_v26 }
 0x11f   : > { %3896 = vmatmul.mubr.f32.vlgmr.msra.gmra.mrb[4].mxu0 %v4717_v12  ;;  %v4809_v12 = vpack.c.bf16 %v912_v21, %v905_v19 }
 0x19a   : > { %v3729_v28 = vpop.f32.mrb[0].mxu0 }
 0x19b   : > { %v814_v29 = vsel %vm301_vm0, %v3729_v28, 0  ;;  %v800_v30 = vpop.f32.mrb[1].mxu0 }
 0x19c   : > { %v893_v31 = vand.u32 4294901760, %v814_v29  ;;  %v811_v32 = vsel %vm301_vm0, %v800_v30, 0 }
 0x19d   : > { %v883_v33 = vand.u32 4294901760, %v811_v32 }
 0x19e   : > { %v894_v34 = vsub.f32 %v814_v29, %v893_v31 }
 0x19f   : > { %v884_v35 = vsub.f32 %v811_v32, %v883_v33 }
 0x1a0   : > { %v895_v36 = vand.u32 4294901760, %v894_v34 }
 0x1a1   : > { %v885_v37 = vand.u32 4294901760, %v884_v35 }
 0x1a2   : > { %v896_v40 = vsub.f32 %v894_v34, %v895_v36 }
 0x1a3   : > { %v886_v41 = vsub.f32 %v884_v35, %v885_v37 }
 0x1a4   : > { %v897_v43 = vand.u32 4294901760, %v896_v40 }
 0x1a5   : > { %v887_v42 = vand.u32 4294901760, %v886_v41 }
 0x1a7   : > { %3734 = vmatprep.mubr.f32.mxu1 %v887_v42 }
 0x1a8   : > { %3735 = vmatmul.mubr.f32.vlgmr.msra.gmra.mrb[0].mxu1 %v897_v43 }
 0x1a9   : > { %3741 = vmatprep.mubr.f32.mxu1 %v883_v33  ;;  %3971 = vmatpush3.bf16.msra.mxu1 %v4806_v26 }
 0x1aa   : > { %3973 = vmatprep.subr.bf16.mxu1 %v4809_v12 }
 0x1b0   : > { %3742 = vmatmul.mubr.f32.vlgmr.msra.gmra.mrb[0].mxu1 %v893_v31 }
 0x1b1   : > { %3748 = vmatprep.mubr.f32.mxu1 %v884_v35  ;;  %3975 = vmatpush3.bf16.msra.mxu1 %v4809_v12 }
 0x1b2   : > { %3977 = vmatprep.subr.bf16.mxu1 %v4802_v18 }
 0x1b8   : > { %3749 = vmatmul.mubr.f32.vlgmr.msra.gmra.mrb[0].mxu1 %v894_v34 }
 0x1b9   : > { %3755 = vmatprep.mubr.f32.mxu1 %v885_v37  ;;  %3979 = vmatpush3.bf16.msra.mxu1 %v4802_v18 }
 0x1ba   : > { %3981 = vmatprep.subr.bf16.mxu1 %v4811_v27 }
 0x1c0   : > { %3756 = vmatmul.mubr.f32.vlgmr.msra.gmra.mrb[0].mxu1 %v895_v36 }
 0x1c1   : > { %3762 = vmatprep.mubr.f32.mxu1 %v883_v33  ;;  %3983 = vmatpush3.bf16.msra.mxu1 %v4811_v27 }
 0x1c2   : > { %3985 = vmatprep.subr.bf16.mxu1 %v4802_v18 }
 0x1c6   : > { %v3813_v44 = vpop.f32.mrb[2].mxu0 }
 0x1c7   : > { %v1844_v45 = vsel %vm301_vm0, %v3813_v44, 0  ;;  %v1830_v46 = vpop.f32.mrb[3].mxu0 }
 0x1c8   : > { %v1923_v47 = vand.u32 4294901760, %v1844_v45  ;;  %v1841_v48 = vsel %vm301_vm0, %v1830_v46, 0  ;;  %3763 = vmatmul.mubr.f32.vlgmr.msra.gmra.mrb[0].mxu1 %v893_v31 }
 0x1c9   : > { %v1913_v49 = vand.u32 4294901760, %v1841_v48  ;;  %3769 = vmatprep.mubr.f32.mxu1 %v883_v33  ;;  %3987 = vmatpush3.bf16.msra.mxu1 %v4802_v18 }
 0x1ca   : > { %v1924_v50 = vsub.f32 %v1844_v45, %v1923_v47  ;;  %4013 = vmatprep.subr.bf16.mxu1 %v4802_v18 }
 0x1cb   : > { %v1914_v51 = vsub.f32 %v1841_v48, %v1913_v49 }
 0x1cc   : > { %v1925_v52 = vand.u32 4294901760, %v1924_v50 }
 0x1cd   : > { %v1915_v53 = vand.u32 4294901760, %v1914_v51 }
 0x1ce   : > { %v1926_v54 = vsub.f32 %v1924_v50, %v1925_v52 }
 0x1cf   : > { %v1916_v55 = vsub.f32 %v1914_v51, %v1915_v53 }
 0x1d0   : > { %3770 = vmatmul.mubr.f32.vlgmr.msra.gmra.mrb[0].mxu1 %v893_v31  ;;  %v1927_v57 = vand.u32 4294901760, %v1926_v54 }
 0x1d1   : > { %4015 = vmatpush3.bf16.msra.mxu1 %v4802_v18  ;;  %v1917_v56 = vand.u32 4294901760, %v1916_v55 }
 0x1d2   : > { %4017 = vmatprep.subr.bf16.mxu1 %v4806_v26 }
 0x1d3   : > { %3818 = vmatprep.mubr.f32.mxu1 %v1917_v56 }
 0x1d4   : > { %3819 = vmatmul.mubr.f32.vlgmr.msra.gmra.mrb[2].mxu1 %v1927_v57 }
 0x1d5   : > { %3825 = vmatprep.mubr.f32.mxu1 %v1913_v49  ;;  %4019 = vmatpush3.bf16.msra.mxu1 %v4806_v26 }
 0x1d6   : > { %4021 = vmatprep.subr.bf16.mxu1 %v4809_v12 }
 0x1dc   : > { %3826 = vmatmul.mubr.f32.vlgmr.msra.gmra.mrb[2].mxu1 %v1923_v47 }
 0x1dd   : > { %3832 = vmatprep.mubr.f32.mxu1 %v1914_v51  ;;  %4023 = vmatpush3.bf16.msra.mxu1 %v4809_v12 }
 0x1de   : > { %4025 = vmatprep.subr.bf16.mxu1 %v4802_v18 }
 0x1e4   : > { %3833 = vmatmul.mubr.f32.vlgmr.msra.gmra.mrb[2].mxu1 %v1924_v50 }
 0x1e5   : > { %3839 = vmatprep.mubr.f32.mxu1 %v1915_v53  ;;  %4027 = vmatpush3.bf16.msra.mxu1 %v4802_v18 }
 0x1e6   : > { %4029 = vmatprep.subr.bf16.mxu1 %v4811_v27 }
 0x1ec   : > { %3840 = vmatmul.mubr.f32.vlgmr.msra.gmra.mrb[2].mxu1 %v1925_v52 }
 0x1ed   : > { %3846 = vmatprep.mubr.f32.mxu1 %v1913_v49  ;;  %4031 = vmatpush3.bf16.msra.mxu1 %v4811_v27 }
 0x1ee   : > { %4033 = vmatprep.subr.bf16.mxu1 %v4802_v18 }
 0x1f2   : > { %v3897_v60 = vpop.f32.mrb[4].mxu0 }
 0x1f3   : > { %v2876_v61 = vsel %vm301_vm0, %v3897_v60, 0  ;;  %v2862_v62 = vpop.f32.mrb[5].mxu0 }
 0x1f4   : > { %v2955_v63 = vand.u32 4294901760, %v2876_v61  ;;  %v2873_v0 = vsel %vm301_vm0, %v2862_v62, 0  ;;  %3847 = vmatmul.mubr.f32.vlgmr.msra.gmra.mrb[2].mxu1 %v1923_v47 }
 0x1f5   : > { %v2945_v1 = vand.u32 4294901760, %v2873_v0  ;;  %3853 = vmatprep.mubr.f32.mxu1 %v1913_v49  ;;  %4035 = vmatpush3.bf16.msra.mxu1 %v4802_v18 }
 0x1f6   : > { %v2956_v2 = vsub.f32 %v2876_v61, %v2955_v63  ;;  %4061 = vmatprep.subr.bf16.mxu1 %v4802_v18 }
 0x1f7   : > { %v2946_v3 = vsub.f32 %v2873_v0, %v2945_v1 }
 0x1f8   : > { %v2957_v5 = vand.u32 4294901760, %v2956_v2 }
 0x1f9   : > { %v2947_v6 = vand.u32 4294901760, %v2946_v3 }
 0x1fa   : > { %v2958_v8 = vsub.f32 %v2956_v2, %v2957_v5 }
 0x1fb   : > { %v2948_v9 = vsub.f32 %v2946_v3, %v2947_v6 }
 0x1fc   : > { %3854 = vmatmul.mubr.f32.vlgmr.msra.gmra.mrb[2].mxu1 %v1923_v47  ;;  %v2959_v13 = vand.u32 4294901760, %v2958_v8 }
 0x1fd   : > { %4063 = vmatpush3.bf16.msra.mxu1 %v4802_v18  ;;  %v2949_v10 = vand.u32 4294901760, %v2948_v9 }
 0x1fe   : > { %4065 = vmatprep.subr.bf16.mxu1 %v4806_v26 }
 0x1ff   : > { %3902 = vmatprep.mubr.f32.mxu1 %v2949_v10 }
 0x200   : > { %3903 = vmatmul.mubr.f32.vlgmr.msra.gmra.mrb[4].mxu1 %v2959_v13 }
 0x201   : > { %3909 = vmatprep.mubr.f32.mxu1 %v2945_v1  ;;  %4067 = vmatpush3.bf16.msra.mxu1 %v4806_v26 }
 0x202   : > { %4069 = vmatprep.subr.bf16.mxu1 %v4809_v12 }
 0x208   : > { %3910 = vmatmul.mubr.f32.vlgmr.msra.gmra.mrb[4].mxu1 %v2955_v63 }
 0x209   : > { %3916 = vmatprep.mubr.f32.mxu1 %v2946_v3  ;;  %4071 = vmatpush3.bf16.msra.mxu1 %v4809_v12 }
 0x20a   : > { %4073 = vmatprep.subr.bf16.mxu1 %v4802_v18 }
 0x210   : > { %3917 = vmatmul.mubr.f32.vlgmr.msra.gmra.mrb[4].mxu1 %v2956_v2 }
 0x211   : > { %3923 = vmatprep.mubr.f32.mxu1 %v2947_v6  ;;  %4075 = vmatpush3.bf16.msra.mxu1 %v4802_v18 }
 0x212   : > { %4077 = vmatprep.subr.bf16.mxu1 %v4811_v27 }
 0x218   : > { %3924 = vmatmul.mubr.f32.vlgmr.msra.gmra.mrb[4].mxu1 %v2957_v5 }
 0x219   : > { %3930 = vmatprep.mubr.f32.mxu1 %v2945_v1  ;;  %4079 = vmatpush3.bf16.msra.mxu1 %v4811_v27 }
 0x21a   : > { %4081 = vmatprep.subr.bf16.mxu1 %v4802_v18 }
 0x220   : > { %3931 = vmatmul.mubr.f32.vlgmr.msra.gmra.mrb[4].mxu1 %v2955_v63 }
 0x221   : > { %3937 = vmatprep.mubr.f32.mxu1 %v2945_v1  ;;  %4083 = vmatpush3.bf16.msra.mxu1 %v4802_v18 }
 0x228   : > { %3938 = vmatmul.mubr.f32.vlgmr.msra.gmra.mrb[4].mxu1 %v2955_v63 }
 0x2a3   : > { %v3771_v14 = vpop.f32.mrb[0].mxu1 }
 0x2a4   : > { %v1308_v16 = vpop.f32.mrb[1].mxu1  ;;  %v1319_v15 = vsub.f32 %v4710_v7, %v3771_v14 }
 0x2a5   : > { %v1318_v17 = vsub.f32 %v4708_v4, %v1308_v16 }
 0x2a6   : > { %v1321_v19 = vmul.f32 %v1319_v15, %v1319_v15 }
 0x2a7   : > { %v1320_v21 = vmul.f32 %v1318_v17, %v1318_v17 }
 0x2a8   : > { %v1323_v20 = vadd.f32 1e-06, %v1321_v19 }
 0x2a9   : > { %v1322_v22 = vadd.f32 1e-06, %v1320_v21 }
 0x2aa   : > { %4223 = vrsqrt.f32 %v1323_v20  ;;  %vm1333_vm1 = vcmp.eq.f32.partialorder %v1323_v20, inf  ;;  %vm1335_vm2 = vcmp.eq.f32.partialorder %v1323_v20, 0.0  ;;  %v1336_v31 = vand.u32 2147483648, %v1323_v20 }
 0x2ab   : > { %4225 = vrsqrt.f32 %v1322_v22  ;;  %vm1326_vm3 = vcmp.eq.f32.partialorder %v1322_v22, inf  ;;  %vm1328_vm4 = vcmp.eq.f32.partialorder %v1322_v22, 0.0  ;;  %v1329_v33 = vand.u32 2147483648, %v1322_v22 }
 0x2b4   : > { %v4224_v7 = vpop.eup %4223 }
 0x2b5   : > { %v4226_v4 = vpop.eup %4225  ;;  %v1332_v28 = vmul.f32 %v4224_v7, %v1323_v20 }
 0x2b6   : > { %v1325_v29 = vmul.f32 %v4226_v4, %v1322_v22 }
 0x2b7   : > { %v1334_v32 = vsel %vm1333_vm1, %v1323_v20, %v1332_v28 }
 0x2b8   : > { %v1327_v34 = vsel %vm1326_vm3, %v1322_v22, %v1325_v29  ;;  %v1337_v41 = vsel %vm1335_vm2, %v1336_v31, %v1334_v32 }
 0x2b9   : > { %v1330_v44 = vsel %vm1328_vm4, %v1329_v33, %v1327_v34 }
 0x2cf   : > { %v3855_v23 = vpop.f32.mrb[2].mxu1 }
 0x2d0   : > { %v2349_v24 = vsub.f32 %v4753_v39, %v3855_v23  ;;  %v2338_v25 = vpop.f32.mrb[3].mxu1 }
 0x2d1   : > { %v2348_v11 = vsub.f32 %v4751_v38, %v2338_v25 }
 0x2d2   : > { %v2351_v18 = vmul.f32 %v2349_v24, %v2349_v24 }
 0x2d3   : > { %v2350_v26 = vmul.f32 %v2348_v11, %v2348_v11 }
 0x2d4   : > { %v2353_v12 = vadd.f32 1e-06, %v2351_v18 }
 0x2d5   : > { %v2352_v27 = vadd.f32 1e-06, %v2350_v26 }
 0x2d6   : > { %4227 = vrsqrt.f32 %v2353_v12  ;;  %vm2363_vm5 = vcmp.eq.f32.partialorder %v2353_v12, inf  ;;  %v2366_v35 = vand.u32 2147483648, %v2353_v12  ;;  %vm2365_vm6 = vcmp.eq.f32.partialorder %v2353_v12, 0.0 }
 0x2d7   : > { %4229 = vrsqrt.f32 %v2352_v27  ;;  %vm2356_vm7 = vcmp.eq.f32.partialorder %v2352_v27, inf  ;;  %v2359_v40 = vand.u32 2147483648, %v2352_v27  ;;  %vm2358_vm8 = vcmp.eq.f32.partialorder %v2352_v27, 0.0 }
 0x2e0   : > { %v4228_v30 = vpop.eup %4227 }
 0x2e1   : > { %v4230_v39 = vpop.eup %4229  ;;  %v2362_v38 = vmul.f32 %v4228_v30, %v2353_v12 }
 0x2e2   : > { %v2355_v36 = vmul.f32 %v4230_v39, %v2352_v27 }
 0x2e3   : > { %v2364_v37 = vsel %vm2363_vm5, %v2353_v12, %v2362_v38 }
 0x2e4   : > { %v2367_v42 = vsel %vm2365_vm6, %v2366_v35, %v2364_v37  ;;  %v2357_v43 = vsel %vm2356_vm7, %v2352_v27, %v2355_v36 }
 0x2e5   : > { %v2369_v45 = vadd.f32 %v2367_v42, %v1337_v41  ;;  %v2360_v46 = vsel %vm2358_vm8, %v2359_v40, %v2357_v43 }
 0x2e6   : > { %v2368_v47 = vadd.f32 %v2360_v46, %v1330_v44 }
 0x2fb   : > { %v3939_v48 = vpop.f32.mrb[4].mxu1 }
 0x2fc   : > { %v3381_v49 = vsub.f32 %v4777_v59, %v3939_v48  ;;  %v3370_v50 = vpop.f32.mrb[5].mxu1 }
 0x2fd   : > { %v3380_v51 = vsub.f32 %v4775_v58, %v3370_v50 }
 0x2fe   : > { %v3383_v52 = vmul.f32 %v3381_v49, %v3381_v49 }
 0x2ff   : > { %v3382_v53 = vmul.f32 %v3380_v51, %v3380_v51 }
 0x300   : > { %v3385_v54 = vadd.f32 1e-06, %v3383_v52 }
 0x301   : > { %v3384_v55 = vadd.f32 1e-06, %v3382_v53 }
 0x302   : > { %4231 = vrsqrt.f32 %v3385_v54  ;;  %vm3395_vm9 = vcmp.eq.f32.partialorder %v3385_v54, inf  ;;  %v3398_v61 = vand.u32 2147483648, %v3385_v54  ;;  %vm3397_vm10 = vcmp.eq.f32.partialorder %v3385_v54, 0.0 }
 0x303   : > { %4233 = vrsqrt.f32 %v3384_v55  ;;  %vm3388_vm11 = vcmp.eq.f32.partialorder %v3384_v55, inf  ;;  %v3391_v59 = vand.u32 2147483648, %v3384_v55  ;;  %vm3390_vm12 = vcmp.eq.f32.partialorder %v3384_v55, 0.0 }
 0x30c   : > { %v4232_v56 = vpop.eup %4231 }
 0x30d   : > { %v4234_v57 = vpop.eup %4233  ;;  %v3394_v60 = vmul.f32 %v4232_v56, %v3385_v54 }
 0x30e   : > { %v3387_v62 = vmul.f32 %v4234_v57, %v3384_v55 }
 0x30f   : > { %v3396_v63 = vsel %vm3395_vm9, %v3385_v54, %v3394_v60 }
 0x310   : > { %v3399_v0 = vsel %vm3397_vm10, %v3398_v61, %v3396_v63  ;;  %v3389_v58 = vsel %vm3388_vm11, %v3384_v55, %v3387_v62 }
 0x311   : > { %v3392_v1 = vsel %vm3390_vm12, %v3391_v59, %v3389_v58  ;;  %v3401_v2 = vadd.f32 %v3399_v0, %v2369_v45 }
 0x312   : > { %v3400_v3 = vadd.f32 %v3392_v1, %v2368_v47 }
 0x313   : > { %v3403_v5 = vsel %vm301_vm0, %v3401_v2, 0.0 }
 0x314   : > { %v3402_v6 = vsel %vm301_vm0, %v3400_v3, 0.0 }
 0x315   : > { %v3404_v8 = vadd.f32 %v3403_v5, %v3402_v6 }
 0x317   : > { %v3405_v9 = vrot.slane %v3404_v8, 4 }
 0x319   : > { %v3406_v10 = vadd.f32 %v3405_v9, %v3404_v8 }
 0x31b   : > { %v3407_v13 = vrot.slane %v3406_v10, 2 }
 0x31d   : > { %v3408_v14 = vadd.f32 %v3407_v13, %v3406_v10 }
 0x31f   : > { %v3409_v16 = vrot.slane %v3408_v14, 1 }
 0x321   : > { %v3410_v15 = vadd.f32 %v3409_v16, %v3408_v14 }
 0x323   : > { %3412 = vst.msk [vmem:[%s278_s8] sm:$0x1] %vm3411_vm13, %v3410_v15 }
 0x324   : > { %4364 = shalt.err (!%p4361_p11)
}
 0x325   : > { %s4365_s7 = scalar_lea.hbm %s4866_s0, 16  ;;  %s4369_s23 = scalar_lea.hbm %s4914_s4, 32 }
 0x326   : > { %p4366_p12 = scmp.ne.s32.totalorder %s4866_s0, %s4365_s7  ;;  %p4370_p3 = scmp.lt.u32.totalorder %s4866_s0, %s4914_s4 }
 0x327   : > { %p4371_p7 = scmp.lt.u32.totalorder %s4369_s23, %s4365_s7  ;;  %p4373_p9 = scmp.lt.u32.totalorder %s4365_s7, %s4866_s0 }
 0x328   : > { %p4367_p2 = pnand %p4366_p12, %p4945_p8 }
 0x329   : > { %p4372_p5 = por %p4371_p7, %p4370_p3 }
 0x32a   : > { %p4368_p13 = pneg %p4367_p2 }
 0x32b   : > { %p4374_p0 = por %p4373_p9, %p4372_p5 }
 0x32d   : > { %p4375_p10 = pnand %p4374_p0, %p4368_p13 }
 0x32f   : > { %4378 = shalt.err (!%p4375_p10)
}
 0x330   : > { %4161 = dma.vmem_to_hbm [thread:$0]  (%p4945_p8), %s4868_s22, 16, %s4866_s0, %s3414_s30  }
 0x331 PF: > { %s3438_s12 = sand.u32 1, %s4413_s15   ;;  %p4946_p1 = scmp.ne.s32.totalorder %s4927_s28, 0 }
 0x332   : > { %p4947_p4 = scmp.ge.s32.totalorder %s4425_s18, 2  ;;  %s3439_s20 = scalar_lea.sflag [#allocation4], %s3438_s12 }
 0x334   : > { %p4178_p6 = pnand %p4947_p4, %p4946_p1 }
 0x336   : > { %4408 = dma.done.wait (!%p4178_p6), %s3439_s20, 16  }
 0x337   : > { %4410 = vsyncadd (!%p4178_p6), %s3439_s20, 4294967280  ;;  %p16_p11 = scmp.ge.s32.totalorder %s4484_s21, 4   ;;  %s4948_s15 = smov %s4417_s16 }
 0x338   : > { %s4949_s16 = smov %s4421_s17  ;;  %s4950_s17 = smov %s4496_s24 }
 0x339   : > { %s4951_s18 = smov %s4484_s21  ;;  %18 = sbr.rel (!%p16_p11) target bundleno = 7 (0x7), region = 99 }
 0x340   :  { %3443 = vsyncpa [#allocation3], 1 }
 0x341   :  { %3445 = vsyncpa [#allocation3 + $0x1], 1 }
 0x342   :  { %3446 = vsyncpa [#allocation6], 1 }
 0x343   :  { %3447 = vsyncpa [#allocation4], 1 }
 0x344   :  { %3449 = vsyncpa [#allocation4 + $0x1], 1 }

</bundles_post_ra>
